<compile_context>
chip_gen: v7x
topology: tpu7x:2x2x1
jax: 0.10.0
libtpu: 0.0.40
codegen_flags: <defaults>
</compile_context>

<pallas_src>
import functools
import math

import jax
import jax.numpy as jnp
from jax import lax
from jax.experimental import pallas as pl
from jax.experimental.pallas import tpu as pltpu


def _round_up(a: int, m: int) -> int:
    return ((a + m - 1) // m) * m


def _clf_kernel(x_ref, w1_ref, b1_ref, w2_ref, b2_ref, out_ref, acc_ref, *,
                inv_len, fold_k, feat_dim, folded_len, mask_seq):
    """x_ref: (tb, tl, fold_k*feat_dim) block of the (lane-folded) input.  Accumulate the
    sequence sum across the 'arbitrary' grid axis; run the classifier MLP on the last step."""
    l = pl.program_id(1)

    @pl.when(l == 0)
    def _():
        acc_ref[...] = jnp.zeros_like(acc_ref)

    xb = x_ref[...]
    if mask_seq:
        # Ragged last sequence tile: rows at/after the true (folded) length read OOB
        # garbage; zero them before accumulating.  (VPU work -> free vs. the HBM read.)
        row = lax.broadcasted_iota(jnp.int32, xb.shape, 1) + l * xb.shape[1]
        xb = jnp.where(row < folded_len, xb, jnp.zeros_like(xb))

    # Partial sum over this sequence tile, accumulated in f32 (bf16-input safe).
    acc_ref[...] += jnp.sum(xb, axis=1, dtype=jnp.float32)

    @pl.when(l == pl.num_programs(1) - 1)
    def _():
        acc = acc_ref[...]                                       # (tb, fold_k * D) f32
        # Fold the lane-packed sequence groups back onto the true embed dim, then mean.
        feats = acc[:, :feat_dim]
        for j in range(1, fold_k):
            feats = feats + acc[:, j * feat_dim:(j + 1) * feat_dim]
        feats = feats * inv_len                                  # (tb, D), mean over true L

        # Linear(D -> H) + bias; norm_layer=None -> Identity; ReLU; Dropout(0.0) -> Identity.
        h = jnp.dot(feats.astype(w1_ref.dtype), w1_ref[...],
                    preferred_element_type=jnp.float32) + b1_ref[...]
        h = jnp.maximum(h, 0.0)

        # Linear(H -> C_pad) + bias (padded columns are exactly zero -> no leakage).
        logits = jnp.dot(h.astype(w2_ref.dtype), w2_ref[...],
                         preferred_element_type=jnp.float32) + b2_ref[...]
        out_ref[...] = logits.astype(out_ref.dtype)


def base_clf_forward(x, w1, b1, w2, b2, *, tb=None, tl=None, use_bf16_weights=False):
    """BaseCLF forward: mean-reduce features over the sequence axis, then the Classifier
    MLP.  x: (B, L, D); w1: (D, H); b1: (H,)|(1,H); w2: (H, C); b2: (C,)|(1,C).
    Linear weights are stored pre-transposed as (in, out)."""
    B, L, D = x.shape
    H = w1.shape[1]
    C = w2.shape[1]
    b1 = b1.reshape(1, H)
    b2 = b2.reshape(1, C)

    if use_bf16_weights:
        # Optional MXU-native bf16 weights (halves resident weight VMEM); off by default to
        # keep f32 numerics identical to the PyTorch module.
        w1 = w1.astype(jnp.bfloat16)
        w2 = w2.astype(jnp.bfloat16)

    # ---- fold sub-128 embed dims into the lane axis (lane-dense VMEM tiles) ----
    fold_k = 1
    if D % 128 != 0:
        k = 128 // math.gcd(D, 128)          # smallest k with (k*D) % 128 == 0
        if L % k == 0:
            fold_k = k
    Lf, Df = L // fold_k, D * fold_k
    if fold_k > 1:
        x = x.reshape(B, Lf, Df)             # contiguous merge of adjacent dims: no HBM copy

    itemsize = jnp.dtype(x.dtype).itemsize
    w_itemsize = jnp.dtype(w1.dtype).itemsize

    # ---- lane-dense output slab (unmasked vst); cheap zero-padding of tiny w2/b2 ----
    C_pad = _round_up(C, 128)
    if C_pad != C:
        w2 = jnp.pad(w2, ((0, 0), (0, C_pad - C)))
        b2 = jnp.pad(b2, ((0, 0), (0, C_pad - C)))

    # ---- batch tile: sublane-aligned; >= 2 tiles so v7x's two TensorCores both get work ----
    if tb is None:
        tb = min(_round_up(B, 8), 256 if B >= 256 else 128)
        if B > 8 and pl.cdiv(B, tb) < 2:
            tb = _round_up(pl.cdiv(B, 2), 8)
    else:
        tb = _round_up(tb, 8)
    tb = min(tb, B)                          # a block dim must not exceed the array dim
    n_b = pl.cdiv(B, tb)

    # ---- per-generation VMEM budget ----
    try:
        vmem_cap = int(pltpu.get_tpu_info().vmem_capacity_bytes)
    except Exception:                        # pragma: no cover - conservative fallback
        vmem_cap = 64 << 20                  # v7x per-TC VMEM
    vmem_limit = max(32 << 20, (vmem_cap * 3) // 4)   # ~96 MiB on 128 MiB parts, ~48 MiB on v7x

    D_lane = _round_up(Df, 128)              # account for lane padding in the estimate
    # Resident operands (counted x2 in case the single-buffer request is rejected).
    weights_vmem = (_round_up(D, 8) * _round_up(H, 128) + _round_up(H, 8) * C_pad
                    + 8 * _round_up(H, 128) + 8 * C_pad) * w_itemsize
    fixed_vmem = 2 * weights_vmem + 2 * tb * C_pad * 4 + tb * D_lane * 4 + (6 << 20)

    # ---- sequence tile: biggest double-buffered x block that fits the budget ----
    if tl is None:
        x_block_budget = max(vmem_limit - fixed_vmem, 4 << 20) // 2
        tl = max(1, x_block_budget // max(1, tb * D_lane * itemsize))
    if tl >= Lf:
        tl = Lf                              # single tile / full-dim block
    else:
        tl = max(8, (tl // 8) * 8)           # (8,128) sublane alignment
        if tl > Lf:                          # only possible when Lf < 8
            tl = Lf
    n_l = pl.cdiv(Lf, tl)
    mask_seq = (Lf % tl) != 0                # ragged last sequence tile -> mask in-kernel

    cost = pl.CostEstimate(
        flops=2 * B * (D * H + H * C_pad) + B * L * D,
        transcendentals=0,
        bytes_accessed=B * L * D * itemsize + weights_vmem + B * C_pad * 4,
    )

    kernel = functools.partial(
        _clf_kernel, inv_len=1.0 / L, fold_k=fold_k, feat_dim=D,
        folded_len=Lf, mask_seq=mask_seq)

    def resident(shape, single_buffer):
        if single_buffer:
            return pl.BlockSpec(shape, lambda i, l: (0, 0), pipeline_mode=pl.Buffered(1))
        return pl.BlockSpec(shape, lambda i, l: (0, 0))

    def build(single_buffer_resident):
        return pl.pallas_call(
            kernel,
            out_shape=jax.ShapeDtypeStruct((B, C_pad), jnp.float32),
            grid=(n_b, n_l),
            in_specs=[
                pl.BlockSpec((tb, tl, Df), lambda i, l: (i, l, 0)),   # x: pipelined blocks
                resident((D, H), single_buffer_resident),             # w1: resident
                resident((1, H), single_buffer_resident),             # b1: resident
                resident((H, C_pad), single_buffer_resident),         # w2: resident
                resident((1, C_pad), single_buffer_resident),         # b2: resident
            ],
            out_specs=pl.BlockSpec((tb, C_pad), lambda i, l: (i, 0)),
            scratch_shapes=[pltpu.VMEM((tb, Df), jnp.float32)],       # f32 sequence-sum acc
            compiler_params=pltpu.CompilerParams(
                dimension_semantics=("parallel", "arbitrary"),
                vmem_limit_bytes=int(vmem_limit),
            ),
            cost_estimate=cost,
        )

    try:
        out = build(True)(x, w1, b1, w2, b2)
    except Exception:
        # pl.Buffered(1) on resident inputs not supported by this JAX -> default pipelining.
        out = build(False)(x, w1, b1, w2, b2)

    return out[:, :C]


def xavier_uniform(key, fan_in, fan_out, shape):
    # torch.nn.init.xavier_uniform_: U(-a, a), a = sqrt(6 / (fan_in + fan_out))
    bound = (6.0 / (fan_in + fan_out)) ** 0.5
    return jax.random.uniform(key, shape, jnp.float32, minval=-bound, maxval=bound)


if __name__ == "__main__":
    # Small shapes consistent with the module:
    # embed_dim=32 (in_features), clf_hidden_features=64, num_classes=10, seq=8, batch=2
    B, L, D, H, C = 2, 8, 32, 64, 10

    key = jax.random.PRNGKey(0)
    kx, kw1, kw2 = jax.random.split(key, 3)

    x = jax.random.normal(kx, (B, L, D), dtype=jnp.float32)

    # nn.Linear weight is (out, in); we store the transpose (in, out) for the kernel.
    # The Xavier bound is symmetric in fan_in/fan_out so the values are equivalent.
    w1 = xavier_uniform(kw1, D, H, (D, H))
    b1 = jnp.zeros((1, H), dtype=jnp.float32)   # nn.init.constant_(bias, 0)
    w2 = xavier_uniform(kw2, H, C, (H, C))
    b2 = jnp.zeros((1, C), dtype=jnp.float32)

    logits = base_clf_forward(x, w1, b1, w2, b2)
    logits = jax.block_until_ready(logits)

    # Reference check in plain JAX (same semantics as the PyTorch module in eval mode).
    feats_ref = jnp.mean(x, axis=1)
    h_ref = jnp.maximum(feats_ref @ w1 + b1, 0.0)
    ref = h_ref @ w2 + b2
    assert logits.shape == (B, C)
    assert jnp.allclose(logits, ref, atol=1e-4, rtol=1e-4), float(jnp.max(jnp.abs(logits - ref)))

    print("KERNEL_OK")
</pallas_src>

<mosaic_0001>
module attributes {stable_mosaic.version = 11 : i64} {
  func.func @_clf_kernel(%arg0: i32, %arg1: i32, %arg2: memref<2x2x128xf32, #tpu.memory_space<vmem>>, %arg3: memref<32x64xf32, #tpu.memory_space<vmem>>, %arg4: memref<1x64xf32, #tpu.memory_space<vmem>>, %arg5: memref<64x128xf32, #tpu.memory_space<vmem>>, %arg6: memref<1x128xf32, #tpu.memory_space<vmem>>, %arg7: memref<2x128xf32, #tpu.memory_space<vmem>>, %arg8: memref<2x128xf32, #tpu.memory_space<vmem>>) attributes {dimension_semantics = [#tpu.dimension_semantics<parallel>, #tpu.dimension_semantics<arbitrary>], iteration_bounds = array<i64: 1, 1>, scalar_prefetch = 0 : i64, scratch_operands = 1 : i64, tpu.core_type = #tpu.core_type<tc>, window_params = [{transform_indices = @transform_0, window_bounds = array<i64: 2, 2, 128>}, {pipeline_mode = #tpu.pipeline_mode<synchronous>, transform_indices = @transform_1, window_bounds = array<i64: 32, 64>}, {pipeline_mode = #tpu.pipeline_mode<synchronous>, transform_indices = @transform_2, window_bounds = array<i64: 1, 64>}, {pipeline_mode = #tpu.pipeline_mode<synchronous>, transform_indices = @transform_3, window_bounds = array<i64: 64, 128>}, {pipeline_mode = #tpu.pipeline_mode<synchronous>, transform_indices = @transform_4, window_bounds = array<i64: 1, 128>}, {transform_indices = @transform_5, window_bounds = array<i64: 2, 128>}]} {
    %c0_i32 = arith.constant 0 : i32
    %0 = arith.cmpi eq, %arg1, %c0_i32 : i32
    %1 = arith.extui %0 : i1 to i32
    %c0_i32_0 = arith.constant 0 : i32
    %2 = arith.cmpi ne, %1, %c0_i32_0 : i32
    scf.if %2 {
      %cst_9 = arith.constant 0.000000e+00 : f32
      %11 = vector.broadcast %cst_9 : f32 to vector<2x128xf32>
      %c0_10 = arith.constant 0 : index
      %c0_11 = arith.constant 0 : index
      %12 = vector.load %arg8[%c0_10, %c0_11] : memref<2x128xf32, #tpu.memory_space<vmem>>, vector<2x128xf32>
      tpu.vector_store %arg8[%c0_10, %c0_11], %11 {strides = array<i32>} : memref<2x128xf32, #tpu.memory_space<vmem>>, vector<2x128xf32>,
    } else {
    }
    %c0 = arith.constant 0 : index
    %c0_1 = arith.constant 0 : index
    %c0_2 = arith.constant 0 : index
    %3 = vector.load %arg2[%c0, %c0_1, %c0_2] : memref<2x2x128xf32, #tpu.memory_space<vmem>>, vector<2x2x128xf32>
    %c0_3 = arith.constant 0 : index
    %c0_4 = arith.constant 0 : index
    %4 = vector.load %arg8[%c0_3, %c0_4] : memref<2x128xf32, #tpu.memory_space<vmem>>, vector<2x128xf32>
    %cst = arith.constant dense<0.000000e+00> : vector<2x128xf32>
    %5 = vector.multi_reduction <add>, %3, %cst [1] : vector<2x2x128xf32> to vector<2x128xf32>
    %6 = arith.addf %4, %5 : vector<2x128xf32>
    %c0_5 = arith.constant 0 : index
    %c0_6 = arith.constant 0 : index
    %7 = vector.load %arg8[%c0_5, %c0_6] : memref<2x128xf32, #tpu.memory_space<vmem>>, vector<2x128xf32>
    tpu.vector_store %arg8[%c0_5, %c0_6], %6 {strides = array<i32>} : memref<2x128xf32, #tpu.memory_space<vmem>>, vector<2x128xf32>,
    %c0_i32_7 = arith.constant 0 : i32
    %8 = arith.cmpi eq, %arg1, %c0_i32_7 : i32
    %9 = arith.extui %8 : i1 to i32
    %c0_i32_8 = arith.constant 0 : i32
    %10 = arith.cmpi ne, %9, %c0_i32_8 : i32
    scf.if %10 {
      %c0_9 = arith.constant 0 : index
      %c0_10 = arith.constant 0 : index
      %11 = vector.load %arg8[%c0_9, %c0_10] : memref<2x128xf32, #tpu.memory_space<vmem>>, vector<2x128xf32>
      %12 = vector.extract_strided_slice %11 {offsets = [0, 0], sizes = [2, 32], strides = [1, 1]} : vector<2x128xf32> to vector<2x32xf32>
      %13 = vector.extract_strided_slice %11 {offsets = [0, 32], sizes = [2, 32], strides = [1, 1]} : vector<2x128xf32> to vector<2x32xf32>
      %14 = arith.addf %12, %13 : vector<2x32xf32>
      %15 = vector.extract_strided_slice %11 {offsets = [0, 64], sizes = [2, 32], strides = [1, 1]} : vector<2x128xf32> to vector<2x32xf32>
      %16 = arith.addf %14, %15 : vector<2x32xf32>
      %17 = vector.extract_strided_slice %11 {offsets = [0, 96], sizes = [2, 32], strides = [1, 1]} : vector<2x128xf32> to vector<2x32xf32>
      %18 = arith.addf %16, %17 : vector<2x32xf32>
      %cst_11 = arith.constant 1.250000e-01 : f32
      %19 = vector.broadcast %cst_11 : f32 to vector<2x32xf32>
      %20 = arith.mulf %18, %19 : vector<2x32xf32>
      %c0_12 = arith.constant 0 : index
      %c0_13 = arith.constant 0 : index
      %21 = vector.load %arg3[%c0_12, %c0_13] : memref<32x64xf32, #tpu.memory_space<vmem>>, vector<32x64xf32>
      %cst_14 = arith.constant dense<0.000000e+00> : vector<2x64xf32>
      %22 = tpu.matmul %20, %21, %cst_14 {dimension_numbers = #tpu.dot_dimension_numbers<[1], [0], [0], [1], [0, 0, 1, 1], [], []>} : vector<2x32xf32>, vector<32x64xf32>, vector<2x64xf32> -> vector<2x64xf32>
      %c0_15 = arith.constant 0 : index
      %c0_16 = arith.constant 0 : index
      %23 = vector.load %arg4[%c0_15, %c0_16] : memref<1x64xf32, #tpu.memory_space<vmem>>, vector<1x64xf32>
      %24 = vector.broadcast %23 : vector<1x64xf32> to vector<2x64xf32>
      %25 = arith.addf %22, %24 : vector<2x64xf32>
      %cst_17 = arith.constant 0.000000e+00 : f32
      %26 = vector.broadcast %cst_17 : f32 to vector<2x64xf32>
      %27 = arith.maximumf %25, %26 : vector<2x64xf32>
      %c0_18 = arith.constant 0 : index
      %c0_19 = arith.constant 0 : index
      %28 = vector.load %arg5[%c0_18, %c0_19] : memref<64x128xf32, #tpu.memory_space<vmem>>, vector<64x128xf32>
      %cst_20 = arith.constant dense<0.000000e+00> : vector<2x128xf32>
      %29 = tpu.matmul %27, %28, %cst_20 {dimension_numbers = #tpu.dot_dimension_numbers<[1], [0], [0], [1], [0, 0, 1, 1], [], []>} : vector<2x64xf32>, vector<64x128xf32>, vector<2x128xf32> -> vector<2x128xf32>
      %c0_21 = arith.constant 0 : index
      %c0_22 = arith.constant 0 : index
      %30 = vector.load %arg6[%c0_21, %c0_22] : memref<1x128xf32, #tpu.memory_space<vmem>>, vector<1x128xf32>
      %31 = vector.broadcast %30 : vector<1x128xf32> to vector<2x128xf32>
      %32 = arith.addf %29, %31 : vector<2x128xf32>
      %c0_23 = arith.constant 0 : index
      %c0_24 = arith.constant 0 : index
      %33 = vector.load %arg7[%c0_23, %c0_24] : memref<2x128xf32, #tpu.memory_space<vmem>>, vector<2x128xf32>
      tpu.vector_store %arg7[%c0_23, %c0_24], %32 {strides = array<i32>} : memref<2x128xf32, #tpu.memory_space<vmem>>, vector<2x128xf32>,
    } else {
    }
    return
  }
  func.func @transform_0(%arg0: i32, %arg1: i32) -> (i32, i32, i32) {
    %c0_i32 = arith.constant 0 : i32
    %c0_i32_0 = arith.constant 0 : i32
    return %arg0, %arg1, %c0_i32 : i32, i32, i32
  }
  func.func @transform_1(%arg0: i32, %arg1: i32) -> (i32, i32) {
    %c0_i32 = arith.constant 0 : i32
    %c0_i32_0 = arith.constant 0 : i32
    %c0_i32_1 = arith.constant 0 : i32
    return %c0_i32, %c0_i32_0 : i32, i32
  }
  func.func @transform_2(%arg0: i32, %arg1: i32) -> (i32, i32) {
    %c0_i32 = arith.constant 0 : i32
    %c0_i32_0 = arith.constant 0 : i32
    %c0_i32_1 = arith.constant 0 : i32
    return %c0_i32, %c0_i32_0 : i32, i32
  }
  func.func @transform_3(%arg0: i32, %arg1: i32) -> (i32, i32) {
    %c0_i32 = arith.constant 0 : i32
    %c0_i32_0 = arith.constant 0 : i32
    %c0_i32_1 = arith.constant 0 : i32
    return %c0_i32, %c0_i32_0 : i32, i32
  }
  func.func @transform_4(%arg0: i32, %arg1: i32) -> (i32, i32) {
    %c0_i32 = arith.constant 0 : i32
    %c0_i32_0 = arith.constant 0 : i32
    %c0_i32_1 = arith.constant 0 : i32
    return %c0_i32, %c0_i32_0 : i32, i32
  }
  func.func @transform_5(%arg0: i32, %arg1: i32) -> (i32, i32) {
    %c0_i32 = arith.constant 0 : i32
    %c0_i32_0 = arith.constant 0 : i32
    return %arg0, %c0_i32 : i32, i32
  }
}

module attributes {stable_mosaic.version = 11 : i64} {
  func.func @_clf_kernel(%arg0: i32, %arg1: i32, %arg2: memref<2x2x128xf32, #tpu.memory_space<vmem>>, %arg3: memref<32x64xf32, #tpu.memory_space<vmem>>, %arg4: memref<1x64xf32, #tpu.memory_space<vmem>>, %arg5: memref<64x128xf32, #tpu.memory_space<vmem>>, %arg6: memref<1x128xf32, #tpu.memory_space<vmem>>, %arg7: memref<2x128xf32, #tpu.memory_space<vmem>>, %arg8: memref<2x128xf32, #tpu.memory_space<vmem>>) attributes {dimension_semantics = [#tpu.dimension_semantics<parallel>, #tpu.dimension_semantics<arbitrary>], iteration_bounds = array<i64: 1, 1>, scalar_prefetch = 0 : i64, scratch_operands = 1 : i64, tpu.core_type = #tpu.core_type<tc>, window_params = [{transform_indices = @transform_0, window_bounds = array<i64: 2, 2, 128>}, {pipeline_mode = #tpu.pipeline_mode<synchronous>, transform_indices = @transform_1, window_bounds = array<i64: 32, 64>}, {pipeline_mode = #tpu.pipeline_mode<synchronous>, transform_indices = @transform_2, window_bounds = array<i64: 1, 64>}, {pipeline_mode = #tpu.pipeline_mode<synchronous>, transform_indices = @transform_3, window_bounds = array<i64: 64, 128>}, {pipeline_mode = #tpu.pipeline_mode<synchronous>, transform_indices = @transform_4, window_bounds = array<i64: 1, 128>}, {transform_indices = @transform_5, window_bounds = array<i64: 2, 128>}]} {
    %c0_i32 = arith.constant 0 : i32
    %0 = arith.cmpi eq, %arg1, %c0_i32 : i32
    %1 = arith.extui %0 : i1 to i32
    %c0_i32_0 = arith.constant 0 : i32
    %2 = arith.cmpi ne, %1, %c0_i32_0 : i32
    scf.if %2 {
      %cst_9 = arith.constant 0.000000e+00 : f32
      %11 = vector.broadcast %cst_9 : f32 to vector<2x128xf32>
      %c0_10 = arith.constant 0 : index
      %c0_11 = arith.constant 0 : index
      %12 = vector.load %arg8[%c0_10, %c0_11] : memref<2x128xf32, #tpu.memory_space<vmem>>, vector<2x128xf32>
      tpu.vector_store %arg8[%c0_10, %c0_11], %11 {strides = array<i32>} : memref<2x128xf32, #tpu.memory_space<vmem>>, vector<2x128xf32>,
    } else {
    }
    %c0 = arith.constant 0 : index
    %c0_1 = arith.constant 0 : index
    %c0_2 = arith.constant 0 : index
    %3 = vector.load %arg2[%c0, %c0_1, %c0_2] : memref<2x2x128xf32, #tpu.memory_space<vmem>>, vector<2x2x128xf32>
    %c0_3 = arith.constant 0 : index
    %c0_4 = arith.constant 0 : index
    %4 = vector.load %arg8[%c0_3, %c0_4] : memref<2x128xf32, #tpu.memory_space<vmem>>, vector<2x128xf32>
    %cst = arith.constant dense<0.000000e+00> : vector<2x128xf32>
    %5 = vector.multi_reduction <add>, %3, %cst [1] : vector<2x2x128xf32> to vector<2x128xf32>
    %6 = arith.addf %4, %5 : vector<2x128xf32>
    %c0_5 = arith.constant 0 : index
    %c0_6 = arith.constant 0 : index
    %7 = vector.load %arg8[%c0_5, %c0_6] : memref<2x128xf32, #tpu.memory_space<vmem>>, vector<2x128xf32>
    tpu.vector_store %arg8[%c0_5, %c0_6], %6 {strides = array<i32>} : memref<2x128xf32, #tpu.memory_space<vmem>>, vector<2x128xf32>,
    %c0_i32_7 = arith.constant 0 : i32
    %8 = arith.cmpi eq, %arg1, %c0_i32_7 : i32
    %9 = arith.extui %8 : i1 to i32
    %c0_i32_8 = arith.constant 0 : i32
    %10 = arith.cmpi ne, %9, %c0_i32_8 : i32
    scf.if %10 {
      %c0_9 = arith.constant 0 : index
      %c0_10 = arith.constant 0 : index
      %11 = vector.load %arg8[%c0_9, %c0_10] : memref<2x128xf32, #tpu.memory_space<vmem>>, vector<2x128xf32>
      %12 = vector.extract_strided_slice %11 {offsets = [0, 0], sizes = [2, 32], strides = [1, 1]} : vector<2x128xf32> to vector<2x32xf32>
      %13 = vector.extract_strided_slice %11 {offsets = [0, 32], sizes = [2, 32], strides = [1, 1]} : vector<2x128xf32> to vector<2x32xf32>
      %14 = arith.addf %12, %13 : vector<2x32xf32>
      %15 = vector.extract_strided_slice %11 {offsets = [0, 64], sizes = [2, 32], strides = [1, 1]} : vector<2x128xf32> to vector<2x32xf32>
      %16 = arith.addf %14, %15 : vector<2x32xf32>
      %17 = vector.extract_strided_slice %11 {offsets = [0, 96], sizes = [2, 32], strides = [1, 1]} : vector<2x128xf32> to vector<2x32xf32>
      %18 = arith.addf %16, %17 : vector<2x32xf32>
      %cst_11 = arith.constant 1.250000e-01 : f32
      %19 = vector.broadcast %cst_11 : f32 to vector<2x32xf32>
      %20 = arith.mulf %18, %19 : vector<2x32xf32>
      %c0_12 = arith.constant 0 : index
      %c0_13 = arith.constant 0 : index
      %21 = vector.load %arg3[%c0_12, %c0_13] : memref<32x64xf32, #tpu.memory_space<vmem>>, vector<32x64xf32>
      %cst_14 = arith.constant dense<0.000000e+00> : vector<2x64xf32>
      %22 = tpu.matmul %20, %21, %cst_14 {dimension_numbers = #tpu.dot_dimension_numbers<[1], [0], [0], [1], [0, 0, 1, 1], [], []>} : vector<2x32xf32>, vector<32x64xf32>, vector<2x64xf32> -> vector<2x64xf32>
      %c0_15 = arith.constant 0 : index
      %c0_16 = arith.constant 0 : index
      %23 = vector.load %arg4[%c0_15, %c0_16] : memref<1x64xf32, #tpu.memory_space<vmem>>, vector<1x64xf32>
      %24 = vector.broadcast %23 : vector<1x64xf32> to vector<2x64xf32>
      %25 = arith.addf %22, %24 : vector<2x64xf32>
      %cst_17 = arith.constant 0.000000e+00 : f32
      %26 = vector.broadcast %cst_17 : f32 to vector<2x64xf32>
      %27 = arith.maximumf %25, %26 : vector<2x64xf32>
      %c0_18 = arith.constant 0 : index
      %c0_19 = arith.constant 0 : index
      %28 = vector.load %arg5[%c0_18, %c0_19] : memref<64x128xf32, #tpu.memory_space<vmem>>, vector<64x128xf32>
      %cst_20 = arith.constant dense<0.000000e+00> : vector<2x128xf32>
      %29 = tpu.matmul %27, %28, %cst_20 {dimension_numbers = #tpu.dot_dimension_numbers<[1], [0], [0], [1], [0, 0, 1, 1], [], []>} : vector<2x64xf32>, vector<64x128xf32>, vector<2x128xf32> -> vector<2x128xf32>
      %c0_21 = arith.constant 0 : index
      %c0_22 = arith.constant 0 : index
      %30 = vector.load %arg6[%c0_21, %c0_22] : memref<1x128xf32, #tpu.memory_space<vmem>>, vector<1x128xf32>
      %31 = vector.broadcast %30 : vector<1x128xf32> to vector<2x128xf32>
      %32 = arith.addf %29, %31 : vector<2x128xf32>
      %c0_23 = arith.constant 0 : index
      %c0_24 = arith.constant 0 : index
      %33 = vector.load %arg7[%c0_23, %c0_24] : memref<2x128xf32, #tpu.memory_space<vmem>>, vector<2x128xf32>
      tpu.vector_store %arg7[%c0_23, %c0_24], %32 {strides = array<i32>} : memref<2x128xf32, #tpu.memory_space<vmem>>, vector<2x128xf32>,
    } else {
    }
    return
  }
  func.func @transform_0(%arg0: i32, %arg1: i32) -> (i32, i32, i32) {
    %c0_i32 = arith.constant 0 : i32
    %c0_i32_0 = arith.constant 0 : i32
    return %arg0, %arg1, %c0_i32 : i32, i32, i32
  }
  func.func @transform_1(%arg0: i32, %arg1: i32) -> (i32, i32) {
    %c0_i32 = arith.constant 0 : i32
    %c0_i32_0 = arith.constant 0 : i32
    %c0_i32_1 = arith.constant 0 : i32
    return %c0_i32, %c0_i32_0 : i32, i32
  }
  func.func @transform_2(%arg0: i32, %arg1: i32) -> (i32, i32) {
    %c0_i32 = arith.constant 0 : i32
    %c0_i32_0 = arith.constant 0 : i32
    %c0_i32_1 = arith.constant 0 : i32
    return %c0_i32, %c0_i32_0 : i32, i32
  }
  func.func @transform_3(%arg0: i32, %arg1: i32) -> (i32, i32) {
    %c0_i32 = arith.constant 0 : i32
    %c0_i32_0 = arith.constant 0 : i32
    %c0_i32_1 = arith.constant 0 : i32
    return %c0_i32, %c0_i32_0 : i32, i32
  }
  func.func @transform_4(%arg0: i32, %arg1: i32) -> (i32, i32) {
    %c0_i32 = arith.constant 0 : i32
    %c0_i32_0 = arith.constant 0 : i32
    %c0_i32_1 = arith.constant 0 : i32
    return %c0_i32, %c0_i32_0 : i32, i32
  }
  func.func @transform_5(%arg0: i32, %arg1: i32) -> (i32, i32) {
    %c0_i32 = arith.constant 0 : i32
    %c0_i32_0 = arith.constant 0 : i32
    return %arg0, %c0_i32 : i32, i32
  }
}

</mosaic_0001>

<bundles_post_ra>
// kernel: tpu_custom_call.1
= control target key start
LH: loop header
LB: loop body
LE: loop exit
PB: predicated region body
PF: predicated region fallthrough
CT: control target
= control target key end

     0   :  { %10 = vsyncpa [#allocation4], 0  ;;  %s581_s0 = inlined_call_operand.hbm [shape: f32[2,2,128], index: 0, kind: input, shape index: {}]   ;;  %s582_s1 = inlined_call_operand.hbm [shape: f32[32,64], index: 1, kind: input, shape index: {}]   ;;  %s583_s2 = inlined_call_operand.vmem [shape: f32[1,64], index: 2, kind: input, shape index: {}]   ;;  %s584_s3 = inlined_call_operand.hbm [shape: f32[64,128], index: 3, kind: input, shape index: {}]   ;;  %s585_s4 = inlined_call_operand.vmem [shape: f32[1,128], index: 4, kind: input, shape index: {}]   ;;  %s586_s5 = inlined_call_operand.hbm [shape: f32[2,128], index: 5, kind: output, shape index: {}]  }
   0x1   :  { %11 = vsyncpa [#allocation7], 0 }
   0x2   :  { %12 = vsyncpa [#allocation5], 0  ;;  %s475_s18 = smov [#allocation6]   ;;  %s381_s22 = scalar_lea.hbm %s582_s1, 512 }
   0x3   :  { %s30_s19 = sshll.u32 %s475_s18, 4  ;;  %p382_p0 = scmp.ne.s32.totalorder %s582_s1, %s381_s22  ;;  %s31_s19 = int_to_ptr.vmem [resolvable:$true] %s30_s19 }
   0x4   :  { %p385_p1 = scmp.lt.u32.totalorder %s381_s22, %s582_s1 }
   0x6   :  { %p387_p2 = pnand %p385_p1, %p382_p0 }
   0x8   :  { %390 = shalt.err (!%p387_p2)
}
   0x9   :  { %s391_s27 = scalar_lea.vmem %s31_s19, 512  ;;  %p396_p4 = scmp.lt.s32.totalorder %s31_s19, %s31_s19 }
   0xa   :  { %p392_p3 = scmp.ne.s32.totalorder %s31_s19, %s391_s27  ;;  %p397_p5 = scmp.lt.s32.totalorder %s391_s27, %s391_s27 }
   0xc   :  { %p398_p6 = por %p397_p5, %p396_p4 }
   0xe   :  { %p399_p7 = pnand %p398_p6, %p392_p3 }
  0x10   :  { %402 = shalt.err (!%p399_p7)
}
  0x11   :  { %s476_s28 = smov 128   ;;  %s477_s29 = smov 8  }
  0x12   :  { %36 = dma.hbm_to_vmem [thread:$0]  %s582_s1, 512, %s31_s19, [#allocation7], %s476_s28, %s476_s28, %s477_s29  }
  0x13   :  { %s478_s7 = smov [#allocation3]   ;;  %s403_s11 = scalar_lea.hbm %s581_s0, 64 }
  0x14   :  { %s18_s8 = sshll.u32 %s478_s7, 4  ;;  %p404_p8 = scmp.ne.s32.totalorder %s581_s0, %s403_s11  ;;  %s19_s8 = int_to_ptr.vmem [resolvable:$true] %s18_s8 }
  0x15   :  { %p407_p9 = scmp.lt.u32.totalorder %s403_s11, %s581_s0 }
  0x17   :  { %p409_p10 = pnand %p407_p9, %p404_p8 }
  0x19   :  { %412 = shalt.err (!%p409_p10)
}
  0x1a   :  { %s413_s16 = scalar_lea.vmem %s19_s8, 64  ;;  %p418_p12 = scmp.lt.s32.totalorder %s19_s8, %s19_s8 }
  0x1b   :  { %p414_p11 = scmp.ne.s32.totalorder %s19_s8, %s413_s16  ;;  %p419_p13 = scmp.lt.s32.totalorder %s413_s16, %s413_s16 }
  0x1d   :  { %p420_p0 = por %p419_p13, %p418_p12 }
  0x1f   :  { %p421_p1 = pnand %p420_p0, %p414_p11 }
  0x21   :  { %424 = shalt.err (!%p421_p1)
}
  0x22   :  { %s479_s1 = smov 32   ;;  %s480_s17 = smov 2  }
  0x23   :  { %24 = dma.hbm_to_vmem [thread:$0]  %s581_s0, 64, %s19_s8, [#allocation4], %s479_s1, %s479_s1, %s480_s17  }
  0x24   :  { %s481_s20 = smov [#allocation8]   ;;  %s425_s24 = scalar_lea.hbm %s584_s3, 1024 }
  0x25   :  { %s44_s21 = sshll.u32 %s481_s20, 4  ;;  %p426_p2 = scmp.ne.s32.totalorder %s584_s3, %s425_s24  ;;  %s45_s21 = int_to_ptr.vmem [resolvable:$true] %s44_s21 }
  0x26   :  { %p429_p3 = scmp.lt.u32.totalorder %s425_s24, %s584_s3 }
  0x28   :  { %p431_p4 = pnand %p429_p3, %p426_p2 }
  0x2a   :  { %434 = shalt.err (!%p431_p4)
}
  0x2b   :  { %s435_s6 = scalar_lea.vmem %s45_s21, 1024  ;;  %p440_p6 = scmp.lt.s32.totalorder %s45_s21, %s45_s21 }
  0x2c   :  { %p436_p5 = scmp.ne.s32.totalorder %s45_s21, %s435_s6  ;;  %p441_p7 = scmp.lt.s32.totalorder %s435_s6, %s435_s6 }
  0x2e   :  { %p442_p8 = por %p441_p7, %p440_p6 }
  0x30   :  { %p443_p9 = pnand %p442_p8, %p436_p5 }
  0x32   :  { %446 = shalt.err (!%p443_p9)
}
  0x33   :  { %50 = dma.hbm_to_vmem [thread:$0]  %s584_s3, 1024, %s45_s21, [#allocation7], %s476_s28, %s476_s28, %s477_s29  }
  0x34   :  { %469 = dma.done.wait [#allocation4], 64  }
  0x35   :  { %470 = vsyncadd [#allocation4], 4294967232 }
  0x36   :  { %471 = dma.done.wait [#allocation7], 1536  }
  0x37   :  { %472 = vsyncadd [#allocation7], 4294965760  ;;  %v482_v0 = vmov 0.0   ;;  %vm70_vm0 = vcmask 1041408   ;;  %v67_v1 = vld [vmem:[#allocation3] sm:$0x3] }
  0x38   :  { %66 = vst [vmem:[#allocation2] sm:$0x3] %v482_v0  ;;  %v68_v2 = vld [vmem:[#allocation3 + $0x2] sm:$0x3]  ;;  %v71_v3 = vsel %vm70_vm0, %v67_v1, 0.0  ;;  %vm87_vm1 = vcmask 1041409  }
  0x39   :  { %v78_v4 = vsel %vm70_vm0, %v68_v2, 0.0  ;;  %v72_v5 = vrot.slane %v71_v3, 4  ;;  %v110_v18 = vld [vmem:[#allocation6] sm:$0xff]  ;;  %v111_v19 = vld [vmem:[#allocation6 + $0x8] sm:$0xff]  ;;  %v483_v20 = vmov 0.0|0.0   ;;  %v112_v24 = vld [vmem:[#allocation6 + $0x10] sm:$0xff] }
  0x3a   :  { %v79_v6 = vrot.slane %v78_v4, 4  ;;  %350 = vmatprep.subr.bf16.mxu0 %v483_v20  ;;  %v351_v21 = vpack.c.bf16 %v111_v19, %v110_v18  ;;  %356 = vmatprep.subr.bf16.mxu1 %v483_v20  ;;  %v113_v25 = vld [vmem:[#allocation6 + $0x18] sm:$0xff]  ;;  %vm484_vm2 = vmmov 0   ;;  %v196_v27 = vld [vmem:[#allocation8] sm:$0xff]  ;;  %v197_v28 = vld [vmem:[#allocation8 + $0x8] sm:$0xff]  ;;  %s485_s3 = smov 96  }
  0x3b   :  { %v73_v7 = vadd.f32 %v72_v5, %v71_v3  ;;  %v354_v26 = vpack.c.bf16 %v113_v25, %v112_v24  ;;  %328 = vmatprep.mubr.msk.f32.mxu0 %vm484_vm2, %v482_v0  ;;  %347 = vmatprep.mubr.msk.f32.mxu1 %vm484_vm2, %v482_v0  ;;  %v357_v29 = vpack.c.bf16 %v197_v28, %v196_v27  ;;  %v198_v30 = vld [vmem:[#allocation8 + $0x10] sm:$0xff]  ;;  %v199_v31 = vld [vmem:[#allocation8 + $0x18] sm:$0xff]  ;;  %v200_v34 = vld [vmem:[#allocation8 + $0x20] sm:$0xff]  ;;  %s486_s28 = smov 64   ;;  %vm121_vm3 = vcmask 261120   ;;  %s487_s11 = smov [#allocation9]  }
  0x3c   :  { %v80_v8 = vadd.f32 %v79_v6, %v78_v4  ;;  %352 = vmatpush3.bf16.msra.mxu0 %v351_v21  ;;  %v360_v33 = vpack.c.bf16 %v199_v31, %v198_v30  ;;  %v201_v35 = vld [vmem:[#allocation8 + $0x28] sm:$0xff]  ;;  %v202_v44 = vld [vmem:[#allocation8 + $0x30] sm:$0xff]  ;;  %v203_v45 = vld [vmem:[#allocation8 + $0x38] sm:$0xff]  ;;  %vm211_vm4 = vcmask 523264   ;;  %s292_s12 = sshll.u32 %s487_s11, 4  ;;  %s293_s12 = int_to_ptr.vmem [resolvable:$true] %s292_s12 }
  0x3d   :  { %v74_v9 = vrot.slane %v73_v7, 2  ;;  %353 = vmatprep.subr.bf16.mxu0 %v483_v20  ;;  %358 = vmatpush3.bf16.msra.mxu1 %v357_v29  ;;  %v363_v36 = vpack.c.bf16 %v201_v35, %v200_v34  ;;  %v366_v46 = vpack.c.bf16 %v203_v45, %v202_v44  ;;  %v302_v47 = vld [vmem:[%s583_s2] ss:$0 sm:$0xff]  ;;  %s447_s13 = scalar_lea.vmem %s293_s12, 32  ;;  %p452_p11 = scmp.lt.s32.totalorder %s293_s12, %s293_s12 }
  0x3e   :  { %v81_v10 = vrot.slane %v80_v8, 2  ;;  %359 = vmatprep.subr.bf16.mxu1 %v483_v20  ;;  %v304_v52 = vld [vmem:[%s585_s4] ss:$0 sm:$0xff]  ;;  %p448_p10 = scmp.ne.s32.totalorder %s293_s12, %s447_s13  ;;  %p453_p12 = scmp.lt.s32.totalorder %s447_s13, %s447_s13 }
  0x3f   :  { %v75_v11 = vadd.f32 %v74_v9, %v73_v7  ;;  %v69_v15 = vld [vmem:[#allocation2] sm:$0x3] }
  0x40   :  { %v82_v12 = vadd.f32 %v81_v10, %v80_v8  ;;  %355 = vmatpush3.bf16.msra.mxu0 %v354_v26  ;;  %p454_p13 = por %p453_p12, %p452_p11 }
  0x41   :  { %v76_v13 = vrot.slane %v75_v11, 1  ;;  %361 = vmatpush3.bf16.msra.mxu1 %v360_v33 }
  0x42   :  { %v83_v14 = vrot.slane %v82_v12, 1  ;;  %362 = vmatprep.subr.bf16.mxu1 %v483_v20  ;;  %p455_p0 = pnand %p454_p13, %p448_p10 }
  0x43   :  { %v77_v16 = vadd.f32 %v76_v13, %v75_v11 }
  0x44   :  { %v84_v17 = vadd.f32 %v83_v14, %v82_v12 }
  0x45   :  { %364 = vmatpush3.bf16.msra.mxu1 %v363_v36 }
  0x46   :  { %v88_v22 = vsel %vm87_vm1, %v84_v17, %v77_v16  ;;  %365 = vmatprep.subr.bf16.mxu1 %v483_v20 }
  0x47   :  { %v90_v23 = vadd.f32 %v88_v22, %v69_v15 }
  0x49   :  { %91 = vst [vmem:[#allocation2] sm:$0x3] %v90_v23  ;;  %367 = vmatpush3.bf16.msra.mxu1 %v366_v46 }
  0x50   :  { %v95_v32 = vld [vmem:[#allocation2] sm:$0x3] }
  0x51   :  { %97 = vrot.lane.b32.xlu0 %v95_v32, %s485_s3  ;;  %105 = vrot.lane.b32.xlu1 %v95_v32, %s479_s1 }
  0x55   :  { %101 = vrot.lane.b32.xlu0 %v95_v32, %s486_s28 }
  0xc3   :  { %v98_v37 = vpop.permute.xlu0 %97  ;;  %v106_v40 = vpop.permute.xlu1 %105 }
  0xc4   :  { %v100_v38 = vadd.f32 %v98_v37, %v95_v32 }
  0xc7   :  { %v102_v39 = vpop.permute.xlu0 %101 }
  0xc8   :  { %v104_v41 = vadd.f32 %v102_v39, %v100_v38 }
  0xca   :  { %v108_v42 = vadd.f32 %v106_v40, %v104_v41 }
  0xcc   :  { %v109_v43 = vmul.f32 0.125, %v108_v42 }
  0xce   :  { %329 = vmatmul.mubr.msk.f32.vlgmr.msra.gmra.mrb[0].mxu0 %vm121_vm3, %v109_v43 }
 0x1a1   :  { %v191_v48 = vpop.f32.mrb[0].mxu0 }
 0x1a2   :  { %v192_v49 = vadd.f32 %v302_v47, %v191_v48  ;;  %v330_v50 = vpop.f32.mrb[1].mxu0 }
 0x1a4   :  { %v195_v51 = vmax.f32 %v192_v49, 0.0 }
 0x1a6   :  { %348 = vmatmul.mubr.msk.f32.vlgmr.msra.gmra.mrb[0].mxu1 %vm211_vm4, %v195_v51 }
 0x279   :  { %v281_v53 = vpop.f32.mrb[0].mxu1 }
 0x27a   :  { %v282_v54 = vadd.f32 %v304_v52, %v281_v53  ;;  %v349_v55 = vpop.f32.mrb[1].mxu1 }
 0x27c   :  { %285 = vst [vmem:[#allocation9] sm:$0x3] %v282_v54 }
 0x27d   :  { %458 = shalt.err (!%p455_p0)
}
 0x27e   :  { %s459_s15 = scalar_lea.hbm %s586_s5, 32 }
 0x27f   :  { %p460_p1 = scmp.ne.s32.totalorder %s586_s5, %s459_s15  ;;  %p463_p2 = scmp.lt.u32.totalorder %s459_s15, %s586_s5 }
 0x281   :  { %p465_p3 = pnand %p463_p2, %p460_p1 }
 0x283   :  { %468 = shalt.err (!%p465_p3)
}
 0x284   :  { %295 = dma.vmem_to_hbm [thread:$0]  %s293_s12, 32, %s586_s5, [#allocation5]  }
 0x285   :  { %473 = dma.done.wait [#allocation5], 32  }
 0x286   :  { %474 = vsyncadd [#allocation5], 4294967264 }
 0x287   :  { %299 = vsyncpa [#allocation4], 1 }
 0x288   :  { %300 = vsyncpa [#allocation7], 1 }
 0x289   :  { %301 = vsyncpa [#allocation5], 1 }

// kernel: tpu_custom_call.1
= control target key start
LH: loop header
LB: loop body
LE: loop exit
PB: predicated region body
PF: predicated region fallthrough
CT: control target
= control target key end

     0   :  { %10 = vsyncpa [#allocation4], 0  ;;  %s581_s0 = inlined_call_operand.hbm [shape: f32[2,2,128], index: 0, kind: input, shape index: {}]   ;;  %s582_s1 = inlined_call_operand.hbm [shape: f32[32,64], index: 1, kind: input, shape index: {}]   ;;  %s583_s2 = inlined_call_operand.vmem [shape: f32[1,64], index: 2, kind: input, shape index: {}]   ;;  %s584_s3 = inlined_call_operand.hbm [shape: f32[64,128], index: 3, kind: input, shape index: {}]   ;;  %s585_s4 = inlined_call_operand.vmem [shape: f32[1,128], index: 4, kind: input, shape index: {}]   ;;  %s586_s5 = inlined_call_operand.hbm [shape: f32[2,128], index: 5, kind: output, shape index: {}]  }
   0x1   :  { %11 = vsyncpa [#allocation7], 0 }
   0x2   :  { %12 = vsyncpa [#allocation5], 0  ;;  %s475_s18 = smov [#allocation6]   ;;  %s381_s22 = scalar_lea.hbm %s582_s1, 512 }
   0x3   :  { %s30_s19 = sshll.u32 %s475_s18, 4  ;;  %p382_p0 = scmp.ne.s32.totalorder %s582_s1, %s381_s22  ;;  %s31_s19 = int_to_ptr.vmem [resolvable:$true] %s30_s19 }
   0x4   :  { %p385_p1 = scmp.lt.u32.totalorder %s381_s22, %s582_s1 }
   0x6   :  { %p387_p2 = pnand %p385_p1, %p382_p0 }
   0x8   :  { %390 = shalt.err (!%p387_p2)
}
   0x9   :  { %s391_s27 = scalar_lea.vmem %s31_s19, 512  ;;  %p396_p4 = scmp.lt.s32.totalorder %s31_s19, %s31_s19 }
   0xa   :  { %p392_p3 = scmp.ne.s32.totalorder %s31_s19, %s391_s27  ;;  %p397_p5 = scmp.lt.s32.totalorder %s391_s27, %s391_s27 }
   0xc   :  { %p398_p6 = por %p397_p5, %p396_p4 }
   0xe   :  { %p399_p7 = pnand %p398_p6, %p392_p3 }
  0x10   :  { %402 = shalt.err (!%p399_p7)
}
  0x11   :  { %s476_s28 = smov 128   ;;  %s477_s29 = smov 8  }
  0x12   :  { %36 = dma.hbm_to_vmem [thread:$0]  %s582_s1, 512, %s31_s19, [#allocation7], %s476_s28, %s476_s28, %s477_s29  }
  0x13   :  { %s478_s7 = smov [#allocation3]   ;;  %s403_s11 = scalar_lea.hbm %s581_s0, 64 }
  0x14   :  { %s18_s8 = sshll.u32 %s478_s7, 4  ;;  %p404_p8 = scmp.ne.s32.totalorder %s581_s0, %s403_s11  ;;  %s19_s8 = int_to_ptr.vmem [resolvable:$true] %s18_s8 }
  0x15   :  { %p407_p9 = scmp.lt.u32.totalorder %s403_s11, %s581_s0 }
  0x17   :  { %p409_p10 = pnand %p407_p9, %p404_p8 }
  0x19   :  { %412 = shalt.err (!%p409_p10)
}
  0x1a   :  { %s413_s16 = scalar_lea.vmem %s19_s8, 64  ;;  %p418_p12 = scmp.lt.s32.totalorder %s19_s8, %s19_s8 }
  0x1b   :  { %p414_p11 = scmp.ne.s32.totalorder %s19_s8, %s413_s16  ;;  %p419_p13 = scmp.lt.s32.totalorder %s413_s16, %s413_s16 }
  0x1d   :  { %p420_p0 = por %p419_p13, %p418_p12 }
  0x1f   :  { %p421_p1 = pnand %p420_p0, %p414_p11 }
  0x21   :  { %424 = shalt.err (!%p421_p1)
}
  0x22   :  { %s479_s1 = smov 32   ;;  %s480_s17 = smov 2  }
  0x23   :  { %24 = dma.hbm_to_vmem [thread:$0]  %s581_s0, 64, %s19_s8, [#allocation4], %s479_s1, %s479_s1, %s480_s17  }
  0x24   :  { %s481_s20 = smov [#allocation8]   ;;  %s425_s24 = scalar_lea.hbm %s584_s3, 1024 }
  0x25   :  { %s44_s21 = sshll.u32 %s481_s20, 4  ;;  %p426_p2 = scmp.ne.s32.totalorder %s584_s3, %s425_s24  ;;  %s45_s21 = int_to_ptr.vmem [resolvable:$true] %s44_s21 }
  0x26   :  { %p429_p3 = scmp.lt.u32.totalorder %s425_s24, %s584_s3 }
  0x28   :  { %p431_p4 = pnand %p429_p3, %p426_p2 }
  0x2a   :  { %434 = shalt.err (!%p431_p4)
}
  0x2b   :  { %s435_s6 = scalar_lea.vmem %s45_s21, 1024  ;;  %p440_p6 = scmp.lt.s32.totalorder %s45_s21, %s45_s21 }
  0x2c   :  { %p436_p5 = scmp.ne.s32.totalorder %s45_s21, %s435_s6  ;;  %p441_p7 = scmp.lt.s32.totalorder %s435_s6, %s435_s6 }
  0x2e   :  { %p442_p8 = por %p441_p7, %p440_p6 }
  0x30   :  { %p443_p9 = pnand %p442_p8, %p436_p5 }
  0x32   :  { %446 = shalt.err (!%p443_p9)
}
  0x33   :  { %50 = dma.hbm_to_vmem [thread:$0]  %s584_s3, 1024, %s45_s21, [#allocation7], %s476_s28, %s476_s28, %s477_s29  }
  0x34   :  { %469 = dma.done.wait [#allocation4], 64  }
  0x35   :  { %470 = vsyncadd [#allocation4], 4294967232 }
  0x36   :  { %471 = dma.done.wait [#allocation7], 1536  }
  0x37   :  { %472 = vsyncadd [#allocation7], 4294965760  ;;  %v482_v0 = vmov 0.0   ;;  %vm70_vm0 = vcmask 1041408   ;;  %v67_v1 = vld [vmem:[#allocation3] sm:$0x3] }
  0x38   :  { %66 = vst [vmem:[#allocation2] sm:$0x3] %v482_v0  ;;  %v68_v2 = vld [vmem:[#allocation3 + $0x2] sm:$0x3]  ;;  %v71_v3 = vsel %vm70_vm0, %v67_v1, 0.0  ;;  %vm87_vm1 = vcmask 1041409  }
  0x39   :  { %v78_v4 = vsel %vm70_vm0, %v68_v2, 0.0  ;;  %v72_v5 = vrot.slane %v71_v3, 4  ;;  %v110_v18 = vld [vmem:[#allocation6] sm:$0xff]  ;;  %v111_v19 = vld [vmem:[#allocation6 + $0x8] sm:$0xff]  ;;  %v483_v20 = vmov 0.0|0.0   ;;  %v112_v24 = vld [vmem:[#allocation6 + $0x10] sm:$0xff] }
  0x3a   :  { %v79_v6 = vrot.slane %v78_v4, 4  ;;  %350 = vmatprep.subr.bf16.mxu0 %v483_v20  ;;  %v351_v21 = vpack.c.bf16 %v111_v19, %v110_v18  ;;  %356 = vmatprep.subr.bf16.mxu1 %v483_v20  ;;  %v113_v25 = vld [vmem:[#allocation6 + $0x18] sm:$0xff]  ;;  %vm484_vm2 = vmmov 0   ;;  %v196_v27 = vld [vmem:[#allocation8] sm:$0xff]  ;;  %v197_v28 = vld [vmem:[#allocation8 + $0x8] sm:$0xff]  ;;  %s485_s3 = smov 96  }
  0x3b   :  { %v73_v7 = vadd.f32 %v72_v5, %v71_v3  ;;  %v354_v26 = vpack.c.bf16 %v113_v25, %v112_v24  ;;  %328 = vmatprep.mubr.msk.f32.mxu0 %vm484_vm2, %v482_v0  ;;  %347 = vmatprep.mubr.msk.f32.mxu1 %vm484_vm2, %v482_v0  ;;  %v357_v29 = vpack.c.bf16 %v197_v28, %v196_v27  ;;  %v198_v30 = vld [vmem:[#allocation8 + $0x10] sm:$0xff]  ;;  %v199_v31 = vld [vmem:[#allocation8 + $0x18] sm:$0xff]  ;;  %v200_v34 = vld [vmem:[#allocation8 + $0x20] sm:$0xff]  ;;  %s486_s28 = smov 64   ;;  %vm121_vm3 = vcmask 261120   ;;  %s487_s11 = smov [#allocation9]  }
  0x3c   :  { %v80_v8 = vadd.f32 %v79_v6, %v78_v4  ;;  %352 = vmatpush3.bf16.msra.mxu0 %v351_v21  ;;  %v360_v33 = vpack.c.bf16 %v199_v31, %v198_v30  ;;  %v201_v35 = vld [vmem:[#allocation8 + $0x28] sm:$0xff]  ;;  %v202_v44 = vld [vmem:[#allocation8 + $0x30] sm:$0xff]  ;;  %v203_v45 = vld [vmem:[#allocation8 + $0x38] sm:$0xff]  ;;  %vm211_vm4 = vcmask 523264   ;;  %s292_s12 = sshll.u32 %s487_s11, 4  ;;  %s293_s12 = int_to_ptr.vmem [resolvable:$true] %s292_s12 }
  0x3d   :  { %v74_v9 = vrot.slane %v73_v7, 2  ;;  %353 = vmatprep.subr.bf16.mxu0 %v483_v20  ;;  %358 = vmatpush3.bf16.msra.mxu1 %v357_v29  ;;  %v363_v36 = vpack.c.bf16 %v201_v35, %v200_v34  ;;  %v366_v46 = vpack.c.bf16 %v203_v45, %v202_v44  ;;  %v302_v47 = vld [vmem:[%s583_s2] ss:$0 sm:$0xff]  ;;  %s447_s13 = scalar_lea.vmem %s293_s12, 32  ;;  %p452_p11 = scmp.lt.s32.totalorder %s293_s12, %s293_s12 }
  0x3e   :  { %v81_v10 = vrot.slane %v80_v8, 2  ;;  %359 = vmatprep.subr.bf16.mxu1 %v483_v20  ;;  %v304_v52 = vld [vmem:[%s585_s4] ss:$0 sm:$0xff]  ;;  %p448_p10 = scmp.ne.s32.totalorder %s293_s12, %s447_s13  ;;  %p453_p12 = scmp.lt.s32.totalorder %s447_s13, %s447_s13 }
  0x3f   :  { %v75_v11 = vadd.f32 %v74_v9, %v73_v7  ;;  %v69_v15 = vld [vmem:[#allocation2] sm:$0x3] }
  0x40   :  { %v82_v12 = vadd.f32 %v81_v10, %v80_v8  ;;  %355 = vmatpush3.bf16.msra.mxu0 %v354_v26  ;;  %p454_p13 = por %p453_p12, %p452_p11 }
  0x41   :  { %v76_v13 = vrot.slane %v75_v11, 1  ;;  %361 = vmatpush3.bf16.msra.mxu1 %v360_v33 }
  0x42   :  { %v83_v14 = vrot.slane %v82_v12, 1  ;;  %362 = vmatprep.subr.bf16.mxu1 %v483_v20  ;;  %p455_p0 = pnand %p454_p13, %p448_p10 }
  0x43   :  { %v77_v16 = vadd.f32 %v76_v13, %v75_v11 }
  0x44   :  { %v84_v17 = vadd.f32 %v83_v14, %v82_v12 }
  0x45   :  { %364 = vmatpush3.bf16.msra.mxu1 %v363_v36 }
  0x46   :  { %v88_v22 = vsel %vm87_vm1, %v84_v17, %v77_v16  ;;  %365 = vmatprep.subr.bf16.mxu1 %v483_v20 }
  0x47   :  { %v90_v23 = vadd.f32 %v88_v22, %v69_v15 }
  0x49   :  { %91 = vst [vmem:[#allocation2] sm:$0x3] %v90_v23  ;;  %367 = vmatpush3.bf16.msra.mxu1 %v366_v46 }
  0x50   :  { %v95_v32 = vld [vmem:[#allocation2] sm:$0x3] }
  0x51   :  { %97 = vrot.lane.b32.xlu0 %v95_v32, %s485_s3  ;;  %105 = vrot.lane.b32.xlu1 %v95_v32, %s479_s1 }
  0x55   :  { %101 = vrot.lane.b32.xlu0 %v95_v32, %s486_s28 }
  0xc3   :  { %v98_v37 = vpop.permute.xlu0 %97  ;;  %v106_v40 = vpop.permute.xlu1 %105 }
  0xc4   :  { %v100_v38 = vadd.f32 %v98_v37, %v95_v32 }
  0xc7   :  { %v102_v39 = vpop.permute.xlu0 %101 }
  0xc8   :  { %v104_v41 = vadd.f32 %v102_v39, %v100_v38 }
  0xca   :  { %v108_v42 = vadd.f32 %v106_v40, %v104_v41 }
  0xcc   :  { %v109_v43 = vmul.f32 0.125, %v108_v42 }
  0xce   :  { %329 = vmatmul.mubr.msk.f32.vlgmr.msra.gmra.mrb[0].mxu0 %vm121_vm3, %v109_v43 }
 0x1a1   :  { %v191_v48 = vpop.f32.mrb[0].mxu0 }
 0x1a2   :  { %v192_v49 = vadd.f32 %v302_v47, %v191_v48  ;;  %v330_v50 = vpop.f32.mrb[1].mxu0 }
 0x1a4   :  { %v195_v51 = vmax.f32 %v192_v49, 0.0 }
 0x1a6   :  { %348 = vmatmul.mubr.msk.f32.vlgmr.msra.gmra.mrb[0].mxu1 %vm211_vm4, %v195_v51 }
 0x279   :  { %v281_v53 = vpop.f32.mrb[0].mxu1 }
 0x27a   :  { %v282_v54 = vadd.f32 %v304_v52, %v281_v53  ;;  %v349_v55 = vpop.f32.mrb[1].mxu1 }
 0x27c   :  { %285 = vst [vmem:[#allocation9] sm:$0x3] %v282_v54 }
 0x27d   :  { %458 = shalt.err (!%p455_p0)
}
 0x27e   :  { %s459_s15 = scalar_lea.hbm %s586_s5, 32 }
 0x27f   :  { %p460_p1 = scmp.ne.s32.totalorder %s586_s5, %s459_s15  ;;  %p463_p2 = scmp.lt.u32.totalorder %s459_s15, %s586_s5 }
 0x281   :  { %p465_p3 = pnand %p463_p2, %p460_p1 }
 0x283   :  { %468 = shalt.err (!%p465_p3)
}
 0x284   :  { %295 = dma.vmem_to_hbm [thread:$0]  %s293_s12, 32, %s586_s5, [#allocation5]  }
 0x285   :  { %473 = dma.done.wait [#allocation5], 32  }
 0x286   :  { %474 = vsyncadd [#allocation5], 4294967264 }
 0x287   :  { %299 = vsyncpa [#allocation4], 1 }
 0x288   :  { %300 = vsyncpa [#allocation7], 1 }
 0x289   :  { %301 = vsyncpa [#allocation5], 1 }

</bundles_post_ra>
